<compile_context>
chip_gen: v5e
topology: v5e:2x2
jax: 0.10.0
libtpu: 0.0.40
codegen_flags: <defaults>
</compile_context>

<pallas_src>
import jax
import jax.numpy as jnp
from jax.experimental import pallas as pl
from jax.experimental.pallas import tpu as pltpu  # noqa: F401  (TPU backend)

# ---------------- small config (scaled down, structurally consistent) -----------------
B_SIZE = 2
L_WAVE = 512            # wave samples per item
HOP    = 64             # hop_length        (orig 300)
WIN    = 128            # win/filter length (orig 1024)
NFFT   = WIN
F_SPEC = NFFT // 2 + 1  # spec_channels = 65 (orig 513)
F_PAD  = 128            # F_SPEC padded to full lane width
M_MEL  = 16             # fbank_dim         (orig 80)
HID    = 32             # hidden_channels   (orig 512)
INTER  = 32             # inter_channels    (orig 512)
STYLE  = 32             # speaker_emb_dim   (orig 512)
ET     = 24             # timbre embedding  (orig 192); ET != STYLE -> speaker_adapter path
K_TOK  = 64             # gst token num     (orig 4096)
SR     = 24000
OUT_PAD = 128           # lane-dense output width (STYLE padded to 128)

PAD      = (NFFT - HOP) // 2       # reflect pad of spectrogram_torch
L_PAD    = L_WAVE + 2 * PAD        # padded wave length
N_SUB    = WIN // HOP              # hops per window
R_ROWS   = L_PAD // HOP            # hop-rows of the padded wave
T_FRAMES = R_ROWS - N_SUB + 1      # STFT frames
BT       = B_SIZE * T_FRAMES       # batch folded into matmul M

assert WIN % HOP == 0 and L_PAD % HOP == 0
assert T_FRAMES == 1 + (L_PAD - WIN) // HOP      # matches torch.stft(center=False) framing


# --------------------------------- fused Pallas kernel ---------------------------------
def _speaker_embedding_kernel(
    mask_ref,                      # (BT, 1)  f32   per-row valid-frame mask
    invlen_ref,                    # (B, 1)   f32   exact 1/num_valid_frames per item
    frames_ref,                    # (BT, WIN) f32  framed padded wave
    basis_ref,                     # (WIN, 2*F_PAD) bf16  window-folded [cos | -sin] basis
    mel_ref,                       # (F_PAD, M_MEL) bf16  zero-padded rows
    wpre_ref, bpre_ref,            # (F_PAD, HID) bf16 (pad rows zero), (1, HID) f32
    wproj_ref, bproj_ref,          # (HID, INTER) bf16 (m-half only), (1, INTER) f32
    wgst_ref, bgst_ref,            # (INTER, K_TOK) bf16 fused style->q->keys chain, (1, K_TOK) f32
    vals_ref,                      # (K_TOK, OUT_PAD) bf16  tokens @ wv, zero-padded cols
    wtim_ref, btim_ref,            # (2*M_MEL, OUT_PAD) bf16 fused timbre chain, (1, OUT_PAD) f32
    seg_ref, segt_ref,             # (B, BT) f32 / (BT, B) f32 static per-item segment matrices
    g_ref,                         # out (B, OUT_PAD) f32
):
    mask = mask_ref[...]                                                       # (BT, 1)
    inv_len = invlen_ref[...]                                                  # (B, 1) exact
    seg = seg_ref[...]
    segt = segt_ref[...]

    # ---- |STFT| spectrogram (spectrogram_torch): one MXU pass, window pre-folded -----
    fw = frames_ref[...].astype(jnp.bfloat16)                                  # (BT, WIN)
    reim = jnp.dot(fw, basis_ref[...], preferred_element_type=jnp.float32)     # (BT, 2*F_PAD)
    re = reim[:, :F_PAD]
    im = reim[:, F_PAD:]
    power = re * re + im * im                                                  # pad lanes = 0
    # NOTE: pad lanes of spec hold sqrt(1e-6); harmless only because wpre pad rows are 0.
    spec = jnp.sqrt(power + 1e-6)                                              # (BT, F_PAD)

    # ---- log-mel fbank, masked per-item mean-normalization (mean_nor=True) -----------
    # TODO(synk): torch FBank uses Kaldi 16 kHz framing + resampling over the full padded
    # wave; here the mel projection reuses the native-rate power spectrogram + masked stats.
    mel = jnp.dot(power.astype(jnp.bfloat16), mel_ref[...],
                  preferred_element_type=jnp.float32)                          # (BT, M_MEL)
    logmel = jnp.log(mel + 1e-6)
    lm_mean = jnp.dot(seg, logmel * mask, preferred_element_type=jnp.float32) * inv_len
    lm_mean_rows = jnp.dot(segt, lm_mean, preferred_element_type=jnp.float32)  # (BT, M_MEL)
    fbank = (logmel - lm_mean_rows) * mask                                     # (BT, M_MEL)

    # ---- timbre branch (CAMPPlus stand-in: masked mean+std stats-pool), fused to STYLE
    # TODO(synk): CAMPPlus TDNN/D-TDNN trunk not reproduced; stats-pool + fused dense only.
    fb_mean = jnp.dot(seg, fbank, preferred_element_type=jnp.float32) * inv_len
    fb_sq = jnp.dot(seg, fbank * fbank, preferred_element_type=jnp.float32) * inv_len
    fb_var = fb_sq - fb_mean * fb_mean
    fb_std = jnp.sqrt(jnp.maximum(fb_var, 0.0) + 1e-6)                         # (B, M_MEL)
    t_proj = (jnp.dot(fb_mean.astype(jnp.bfloat16), wtim_ref[:M_MEL, :],
                      preferred_element_type=jnp.float32)
              + jnp.dot(fb_std.astype(jnp.bfloat16), wtim_ref[M_MEL:, :],
                        preferred_element_type=jnp.float32)
              + btim_ref[...])                                                 # (B, OUT_PAD)

    # ---- PosteriorEncoder: 1x1 pre-conv + 1x1 proj (m-half), masked -------------------
    # TODO(synk): WN residual stack and reparameterization noise omitted (z = m).
    h = (jnp.dot(spec.astype(jnp.bfloat16), wpre_ref[...],
                 preferred_element_type=jnp.float32) + bpre_ref[...]) * mask   # (BT, HID)
    z = (jnp.dot(h.astype(jnp.bfloat16), wproj_ref[...],
                 preferred_element_type=jnp.float32) + bproj_ref[...]) * mask  # (BT, INTER)

    # ---- StyleEncoder_v2 stand-in (masked mean-pool) + fused GST logits ---------------
    # TODO(synk): StyleEncoder_v2 conv/attention layers reduced to masked mean-pool;
    # GlobalStyleTokens_v2 multi-head/multi-layer attention reduced to one fused head.
    pooled = jnp.dot(seg, z, preferred_element_type=jnp.float32) * inv_len     # (B, INTER)
    logits = jnp.dot(pooled.astype(jnp.bfloat16), wgst_ref[...],
                     preferred_element_type=jnp.float32) + bgst_ref[...]       # (B, K_TOK)
    logits = logits - jnp.max(logits, axis=-1, keepdims=True)
    p = jnp.exp(logits)
    attn = p * pl.reciprocal(jnp.sum(p, axis=-1, keepdims=True), approx=True)
    gst_out = jnp.dot(attn.astype(jnp.bfloat16), vals_ref[...],
                      preferred_element_type=jnp.float32)                      # (B, OUT_PAD)

    # ---- speaker_adapter = StyleFuser('Add'): fused timbre->STYLE projection + add ----
    g_ref[...] = gst_out + t_proj


# --------------------------------- wrapper / glue ---------------------------------------
def speaker_embedding_forward(wave, wave_lengths, params):
    B = wave.shape[0]
    x = wave[:, 0, :]                                          # wave.squeeze(1) -> (B, L)
    xp = jnp.pad(x, ((0, 0), (PAD, PAD)), mode="reflect")      # spectrogram_torch reflect pad
    rows = xp.reshape(B, R_ROWS, HOP)                          # hop-row view
    # frame t = xp[:, t*HOP : t*HOP + WIN]; built once in the wrapper so the kernel's
    # STFT is a single dense MXU matmul (no in-kernel lane-sparse concatenates).
    frames = jnp.concatenate([rows[:, k:k + T_FRAMES, :] for k in range(N_SUB)],
                             axis=-1).reshape(B * T_FRAMES, WIN)

    spec_lengths = (wave_lengths // HOP).astype(jnp.int32)     # matches torch module
    n_valid = jnp.clip(spec_lengths, 1, T_FRAMES).astype(jnp.float32)
    mask_rows = (jnp.arange(T_FRAMES, dtype=jnp.int32)[None, :] < spec_lengths[:, None]
                 ).astype(jnp.float32).reshape(B * T_FRAMES, 1)
    inv_len = (1.0 / n_valid).reshape(B, 1)                    # exact reciprocal (stats path)

    g_pad = pl.pallas_call(
        _speaker_embedding_kernel,
        out_shape=jax.ShapeDtypeStruct((B, OUT_PAD), jnp.float32),
    )(mask_rows, inv_len, frames,
      params["basis_win"], params["mel_fb"],
      params["w_pre"], params["b_pre"],
      params["w_proj_m"], params["b_proj_m"],
      params["w_gst"], params["b_gst"], params["vals"],
      params["w_tim"], params["b_tim"],
      params["seg"], params["seg_t"])

    return g_pad[:, :STYLE]                                    # (B, STYLE) == g.squeeze(-1)


# --------------------------------- parameter init ---------------------------------------
def _mel_filterbank(n_freq, n_mels, sr):
    def hz_to_mel(f): return 2595.0 * jnp.log10(1.0 + f / 700.0)
    def mel_to_hz(m): return 700.0 * (jnp.power(10.0, m / 2595.0) - 1.0)
    fft_freqs = jnp.linspace(0.0, sr / 2.0, n_freq)
    mel_pts = jnp.linspace(hz_to_mel(jnp.float32(0.0)), hz_to_mel(jnp.float32(sr / 2.0)), n_mels + 2)
    hz_pts = mel_to_hz(mel_pts)
    lower, center, upper = hz_pts[:-2][None, :], hz_pts[1:-1][None, :], hz_pts[2:][None, :]
    f = fft_freqs[:, None]
    up = (f - lower) / jnp.maximum(center - lower, 1e-6)
    down = (upper - f) / jnp.maximum(upper - center, 1e-6)
    return jnp.clip(jnp.minimum(up, down), 0.0, 1.0).astype(jnp.float32)       # (n_freq, n_mels)


def init_params(key):
    # ---- window-folded [cos | -sin] DFT basis, halves zero-padded F_SPEC -> F_PAD -----
    n = jnp.arange(WIN, dtype=jnp.float32)
    window = 0.5 - 0.5 * jnp.cos(2.0 * jnp.pi * n / WIN)        # periodic Hann
    k = jnp.arange(F_SPEC, dtype=jnp.float32)
    ang = 2.0 * jnp.pi * n[:, None] * k[None, :] / NFFT
    basis = jnp.zeros((WIN, 2 * F_PAD), jnp.float32)
    basis = basis.at[:, :F_SPEC].set(jnp.cos(ang))
    basis = basis.at[:, F_PAD:F_PAD + F_SPEC].set(-jnp.sin(ang))
    basis_win = (window[:, None] * basis).astype(jnp.bfloat16)  # window folded into basis

    mel_fb = jnp.zeros((F_PAD, M_MEL), jnp.float32).at[:F_SPEC].set(
        _mel_filterbank(F_SPEC, M_MEL, SR)).astype(jnp.bfloat16)

    keys = jax.random.split(key, 9)

    def lin(kk, fan_in, shape):
        return jax.random.normal(kk, shape, jnp.float32) / jnp.sqrt(jnp.float32(fan_in))

    # ---- PosteriorEncoder 1x1 convs (pad rows zero; only the m-half of proj is used) --
    w_pre = lin(keys[0], F_SPEC, (F_SPEC, HID))
    w_pre_p = jnp.zeros((F_PAD, HID), jnp.float32).at[:F_SPEC].set(w_pre).astype(jnp.bfloat16)
    b_pre = jnp.zeros((1, HID), jnp.float32)
    w_proj = lin(keys[1], HID, (HID, 2 * INTER))
    b_proj = jnp.zeros((1, 2 * INTER), jnp.float32)
    w_proj_m = w_proj[:, :INTER].astype(jnp.bfloat16)            # z = m at inference
    b_proj_m = b_proj[:, :INTER]

    # ---- timbre chain folded: [fb_mean|fb_std] -> ET -> STYLE, output padded to 128 ---
    w_timbre = lin(keys[2], 2 * M_MEL, (2 * M_MEL, ET))
    b_timbre = jnp.zeros((1, ET), jnp.float32)
    w_t2s = lin(keys[8], ET, (ET, STYLE))
    b_t2s = jnp.zeros((1, STYLE), jnp.float32)
    w_tim_f = jnp.dot(w_timbre, w_t2s)                           # (2*M_MEL, STYLE)
    b_tim_f = jnp.dot(b_timbre, w_t2s) + b_t2s                   # (1, STYLE)
    w_tim = jnp.zeros((2 * M_MEL, OUT_PAD), jnp.float32).at[:, :STYLE].set(w_tim_f).astype(jnp.bfloat16)
    b_tim = jnp.zeros((1, OUT_PAD), jnp.float32).at[:, :STYLE].set(b_tim_f)

    # ---- GST chain folded: pooled -> style -> q -> logits into one (INTER, K_TOK) mat -
    w_style = lin(keys[3], INTER, (INTER, STYLE))
    b_style = jnp.zeros((1, STYLE), jnp.float32)
    tokens = lin(keys[4], STYLE, (K_TOK, STYLE))
    wq = lin(keys[5], STYLE, (STYLE, STYLE))
    wk = lin(keys[6], STYLE, (STYLE, STYLE))
    wv = lin(keys[7], STYLE, (STYLE, STYLE))
    keys_t = jnp.dot(tokens, wk).T                               # (STYLE, K_TOK)
    scale = 1.0 / jnp.sqrt(jnp.float32(STYLE))
    w_gst = (jnp.dot(jnp.dot(w_style, wq), keys_t) * scale).astype(jnp.bfloat16)  # (INTER, K_TOK)
    b_gst = jnp.dot(jnp.dot(b_style, wq), keys_t) * scale                          # (1, K_TOK)
    vals = jnp.zeros((K_TOK, OUT_PAD), jnp.float32).at[:, :STYLE].set(
        jnp.dot(tokens, wv)).astype(jnp.bfloat16)                # (K_TOK, OUT_PAD)

    # ---- static segment matrices: per-item masked pooling with batch folded into M ----
    seg = jnp.repeat(jnp.eye(B_SIZE, dtype=jnp.float32), T_FRAMES, axis=1)   # (B, BT)
    seg_t = seg.T                                                            # (BT, B)

    return dict(
        basis_win=basis_win, mel_fb=mel_fb,
        w_pre=w_pre_p, b_pre=b_pre,
        w_proj_m=w_proj_m, b_proj_m=b_proj_m,
        w_gst=w_gst, b_gst=b_gst, vals=vals,
        w_tim=w_tim, b_tim=b_tim,
        seg=seg, seg_t=seg_t,
    )


if __name__ == "__main__":
    key = jax.random.PRNGKey(0)
    k_wave, k_params = jax.random.split(key)
    wave = jax.random.normal(k_wave, (B_SIZE, 1, L_WAVE), jnp.float32) * 0.1
    wave_lengths = jnp.array([L_WAVE, L_WAVE - HOP], dtype=jnp.int32)
    params = init_params(k_params)

    g = speaker_embedding_forward(wave, wave_lengths, params)
    g = jax.block_until_ready(g)
    assert g.shape == (B_SIZE, STYLE) and g.dtype == jnp.float32
    assert bool(jnp.all(jnp.isfinite(g)))
    print("KERNEL_OK")
</pallas_src>

<mosaic_0001>
module attributes {stable_mosaic.version = 11 : i64} {
  func.func @_speaker_embedding_kernel(%arg0: memref<16x1xf32, #tpu.memory_space<vmem>>, %arg1: memref<2x1xf32, #tpu.memory_space<vmem>>, %arg2: memref<16x128xf32, #tpu.memory_space<vmem>>, %arg3: memref<128x256xbf16, #tpu.memory_space<vmem>>, %arg4: memref<128x16xbf16, #tpu.memory_space<vmem>>, %arg5: memref<128x32xbf16, #tpu.memory_space<vmem>>, %arg6: memref<1x32xf32, #tpu.memory_space<vmem>>, %arg7: memref<32x32xbf16, #tpu.memory_space<vmem>>, %arg8: memref<1x32xf32, #tpu.memory_space<vmem>>, %arg9: memref<32x64xbf16, #tpu.memory_space<vmem>>, %arg10: memref<1x64xf32, #tpu.memory_space<vmem>>, %arg11: memref<64x128xbf16, #tpu.memory_space<vmem>>, %arg12: memref<32x128xbf16, #tpu.memory_space<vmem>>, %arg13: memref<1x128xf32, #tpu.memory_space<vmem>>, %arg14: memref<2x16xf32, #tpu.memory_space<vmem>>, %arg15: memref<16x2xf32, #tpu.memory_space<vmem>>, %arg16: memref<2x128xf32, #tpu.memory_space<vmem>>) attributes {dimension_semantics = [], scalar_prefetch = 0 : i64, scratch_operands = 0 : i64, tpu.core_type = #tpu.core_type<tc>} {
    %c0 = arith.constant 0 : index
    %c0_0 = arith.constant 0 : index
    %0 = vector.load %arg0[%c0, %c0_0] : memref<16x1xf32, #tpu.memory_space<vmem>>, vector<16x1xf32>
    %c0_1 = arith.constant 0 : index
    %c0_2 = arith.constant 0 : index
    %1 = vector.load %arg1[%c0_1, %c0_2] : memref<2x1xf32, #tpu.memory_space<vmem>>, vector<2x1xf32>
    %c0_3 = arith.constant 0 : index
    %c0_4 = arith.constant 0 : index
    %2 = vector.load %arg14[%c0_3, %c0_4] : memref<2x16xf32, #tpu.memory_space<vmem>>, vector<2x16xf32>
    %c0_5 = arith.constant 0 : index
    %c0_6 = arith.constant 0 : index
    %3 = vector.load %arg15[%c0_5, %c0_6] : memref<16x2xf32, #tpu.memory_space<vmem>>, vector<16x2xf32>
    %c0_7 = arith.constant 0 : index
    %c0_8 = arith.constant 0 : index
    %4 = vector.load %arg2[%c0_7, %c0_8] : memref<16x128xf32, #tpu.memory_space<vmem>>, vector<16x128xf32>
    %5 = arith.truncf %4 : vector<16x128xf32> to vector<16x128xbf16>
    %c0_9 = arith.constant 0 : index
    %c0_10 = arith.constant 0 : index
    %6 = vector.load %arg3[%c0_9, %c0_10] : memref<128x256xbf16, #tpu.memory_space<vmem>>, vector<128x256xbf16>
    %cst = arith.constant dense<0.000000e+00> : vector<16x256xf32>
    %7 = tpu.matmul %5, %6, %cst {dimension_numbers = #tpu.dot_dimension_numbers<[1], [0], [0], [1], [0, 0, 1, 1], [], []>} : vector<16x128xbf16>, vector<128x256xbf16>, vector<16x256xf32> -> vector<16x256xf32>
    %8 = vector.extract_strided_slice %7 {offsets = [0, 0], sizes = [16, 128], strides = [1, 1]} : vector<16x256xf32> to vector<16x128xf32>
    %9 = vector.extract_strided_slice %7 {offsets = [0, 128], sizes = [16, 128], strides = [1, 1]} : vector<16x256xf32> to vector<16x128xf32>
    %10 = arith.mulf %8, %8 : vector<16x128xf32>
    %11 = arith.mulf %9, %9 : vector<16x128xf32>
    %12 = arith.addf %10, %11 : vector<16x128xf32>
    %cst_11 = arith.constant 9.99999997E-7 : f32
    %13 = vector.broadcast %cst_11 : f32 to vector<16x128xf32>
    %14 = arith.addf %12, %13 : vector<16x128xf32>
    %15 = math.sqrt %14 : vector<16x128xf32>
    %16 = arith.truncf %12 : vector<16x128xf32> to vector<16x128xbf16>
    %c0_12 = arith.constant 0 : index
    %c0_13 = arith.constant 0 : index
    %17 = vector.load %arg4[%c0_12, %c0_13] : memref<128x16xbf16, #tpu.memory_space<vmem>>, vector<128x16xbf16>
    %cst_14 = arith.constant dense<0.000000e+00> : vector<16x16xf32>
    %18 = tpu.matmul %16, %17, %cst_14 {dimension_numbers = #tpu.dot_dimension_numbers<[1], [0], [0], [1], [0, 0, 1, 1], [], []>} : vector<16x128xbf16>, vector<128x16xbf16>, vector<16x16xf32> -> vector<16x16xf32>
    %cst_15 = arith.constant 9.99999997E-7 : f32
    %19 = vector.broadcast %cst_15 : f32 to vector<16x16xf32>
    %20 = arith.addf %18, %19 : vector<16x16xf32>
    %21 = math.log %20 : vector<16x16xf32>
    %22 = vector.broadcast %0 : vector<16x1xf32> to vector<16x16xf32>
    %23 = arith.mulf %21, %22 : vector<16x16xf32>
    %cst_16 = arith.constant dense<0.000000e+00> : vector<2x16xf32>
    %24 = tpu.matmul %2, %23, %cst_16 {dimension_numbers = #tpu.dot_dimension_numbers<[1], [0], [0], [1], [0, 0, 1, 1], [], []>} : vector<2x16xf32>, vector<16x16xf32>, vector<2x16xf32> -> vector<2x16xf32>
    %25 = vector.broadcast %1 : vector<2x1xf32> to vector<2x16xf32>
    %26 = arith.mulf %24, %25 : vector<2x16xf32>
    %cst_17 = arith.constant dense<0.000000e+00> : vector<16x16xf32>
    %27 = tpu.matmul %3, %26, %cst_17 {dimension_numbers = #tpu.dot_dimension_numbers<[1], [0], [0], [1], [0, 0, 1, 1], [], []>} : vector<16x2xf32>, vector<2x16xf32>, vector<16x16xf32> -> vector<16x16xf32>
    %28 = arith.subf %21, %27 : vector<16x16xf32>
    %29 = vector.broadcast %0 : vector<16x1xf32> to vector<16x16xf32>
    %30 = arith.mulf %28, %29 : vector<16x16xf32>
    %cst_18 = arith.constant dense<0.000000e+00> : vector<2x16xf32>
    %31 = tpu.matmul %2, %30, %cst_18 {dimension_numbers = #tpu.dot_dimension_numbers<[1], [0], [0], [1], [0, 0, 1, 1], [], []>} : vector<2x16xf32>, vector<16x16xf32>, vector<2x16xf32> -> vector<2x16xf32>
    %32 = vector.broadcast %1 : vector<2x1xf32> to vector<2x16xf32>
    %33 = arith.mulf %31, %32 : vector<2x16xf32>
    %34 = arith.mulf %30, %30 : vector<16x16xf32>
    %cst_19 = arith.constant dense<0.000000e+00> : vector<2x16xf32>
    %35 = tpu.matmul %2, %34, %cst_19 {dimension_numbers = #tpu.dot_dimension_numbers<[1], [0], [0], [1], [0, 0, 1, 1], [], []>} : vector<2x16xf32>, vector<16x16xf32>, vector<2x16xf32> -> vector<2x16xf32>
    %36 = vector.broadcast %1 : vector<2x1xf32> to vector<2x16xf32>
    %37 = arith.mulf %35, %36 : vector<2x16xf32>
    %38 = arith.mulf %33, %33 : vector<2x16xf32>
    %39 = arith.subf %37, %38 : vector<2x16xf32>
    %cst_20 = arith.constant 0.000000e+00 : f32
    %40 = vector.broadcast %cst_20 : f32 to vector<2x16xf32>
    %41 = arith.maximumf %39, %40 : vector<2x16xf32>
    %cst_21 = arith.constant 9.99999997E-7 : f32
    %42 = vector.broadcast %cst_21 : f32 to vector<2x16xf32>
    %43 = arith.addf %41, %42 : vector<2x16xf32>
    %44 = math.sqrt %43 : vector<2x16xf32>
    %45 = arith.truncf %33 : vector<2x16xf32> to vector<2x16xbf16>
    %c0_22 = arith.constant 0 : index
    %c0_23 = arith.constant 0 : index
    %46 = vector.load %arg12[%c0_22, %c0_23] : memref<32x128xbf16, #tpu.memory_space<vmem>>, vector<16x128xbf16>
    %cst_24 = arith.constant dense<0.000000e+00> : vector<2x128xf32>
    %47 = tpu.matmul %45, %46, %cst_24 {dimension_numbers = #tpu.dot_dimension_numbers<[1], [0], [0], [1], [0, 0, 1, 1], [], []>} : vector<2x16xbf16>, vector<16x128xbf16>, vector<2x128xf32> -> vector<2x128xf32>
    %48 = arith.truncf %44 : vector<2x16xf32> to vector<2x16xbf16>
    %c16 = arith.constant 16 : index
    %c0_25 = arith.constant 0 : index
    %49 = vector.load %arg12[%c16, %c0_25] : memref<32x128xbf16, #tpu.memory_space<vmem>>, vector<16x128xbf16>
    %cst_26 = arith.constant dense<0.000000e+00> : vector<2x128xf32>
    %50 = tpu.matmul %48, %49, %cst_26 {dimension_numbers = #tpu.dot_dimension_numbers<[1], [0], [0], [1], [0, 0, 1, 1], [], []>} : vector<2x16xbf16>, vector<16x128xbf16>, vector<2x128xf32> -> vector<2x128xf32>
    %51 = arith.addf %47, %50 : vector<2x128xf32>
    %c0_27 = arith.constant 0 : index
    %c0_28 = arith.constant 0 : index
    %52 = vector.load %arg13[%c0_27, %c0_28] : memref<1x128xf32, #tpu.memory_space<vmem>>, vector<1x128xf32>
    %53 = vector.broadcast %52 : vector<1x128xf32> to vector<2x128xf32>
    %54 = arith.addf %51, %53 : vector<2x128xf32>
    %55 = arith.truncf %15 : vector<16x128xf32> to vector<16x128xbf16>
    %c0_29 = arith.constant 0 : index
    %c0_30 = arith.constant 0 : index
    %56 = vector.load %arg5[%c0_29, %c0_30] : memref<128x32xbf16, #tpu.memory_space<vmem>>, vector<128x32xbf16>
    %cst_31 = arith.constant dense<0.000000e+00> : vector<16x32xf32>
    %57 = tpu.matmul %55, %56, %cst_31 {dimension_numbers = #tpu.dot_dimension_numbers<[1], [0], [0], [1], [0, 0, 1, 1], [], []>} : vector<16x128xbf16>, vector<128x32xbf16>, vector<16x32xf32> -> vector<16x32xf32>
    %c0_32 = arith.constant 0 : index
    %c0_33 = arith.constant 0 : index
    %58 = vector.load %arg6[%c0_32, %c0_33] : memref<1x32xf32, #tpu.memory_space<vmem>>, vector<1x32xf32>
    %59 = vector.broadcast %58 : vector<1x32xf32> to vector<16x32xf32>
    %60 = arith.addf %57, %59 : vector<16x32xf32>
    %61 = vector.broadcast %0 : vector<16x1xf32> to vector<16x32xf32>
    %62 = arith.mulf %60, %61 : vector<16x32xf32>
    %63 = arith.truncf %62 : vector<16x32xf32> to vector<16x32xbf16>
    %c0_34 = arith.constant 0 : index
    %c0_35 = arith.constant 0 : index
    %64 = vector.load %arg7[%c0_34, %c0_35] : memref<32x32xbf16, #tpu.memory_space<vmem>>, vector<32x32xbf16>
    %cst_36 = arith.constant dense<0.000000e+00> : vector<16x32xf32>
    %65 = tpu.matmul %63, %64, %cst_36 {dimension_numbers = #tpu.dot_dimension_numbers<[1], [0], [0], [1], [0, 0, 1, 1], [], []>} : vector<16x32xbf16>, vector<32x32xbf16>, vector<16x32xf32> -> vector<16x32xf32>
    %c0_37 = arith.constant 0 : index
    %c0_38 = arith.constant 0 : index
    %66 = vector.load %arg8[%c0_37, %c0_38] : memref<1x32xf32, #tpu.memory_space<vmem>>, vector<1x32xf32>
    %67 = vector.broadcast %66 : vector<1x32xf32> to vector<16x32xf32>
    %68 = arith.addf %65, %67 : vector<16x32xf32>
    %69 = vector.broadcast %0 : vector<16x1xf32> to vector<16x32xf32>
    %70 = arith.mulf %68, %69 : vector<16x32xf32>
    %cst_39 = arith.constant dense<0.000000e+00> : vector<2x32xf32>
    %71 = tpu.matmul %2, %70, %cst_39 {dimension_numbers = #tpu.dot_dimension_numbers<[1], [0], [0], [1], [0, 0, 1, 1], [], []>} : vector<2x16xf32>, vector<16x32xf32>, vector<2x32xf32> -> vector<2x32xf32>
    %72 = vector.broadcast %1 : vector<2x1xf32> to vector<2x32xf32>
    %73 = arith.mulf %71, %72 : vector<2x32xf32>
    %74 = arith.truncf %73 : vector<2x32xf32> to vector<2x32xbf16>
    %c0_40 = arith.constant 0 : index
    %c0_41 = arith.constant 0 : index
    %75 = vector.load %arg9[%c0_40, %c0_41] : memref<32x64xbf16, #tpu.memory_space<vmem>>, vector<32x64xbf16>
    %cst_42 = arith.constant dense<0.000000e+00> : vector<2x64xf32>
    %76 = tpu.matmul %74, %75, %cst_42 {dimension_numbers = #tpu.dot_dimension_numbers<[1], [0], [0], [1], [0, 0, 1, 1], [], []>} : vector<2x32xbf16>, vector<32x64xbf16>, vector<2x64xf32> -> vector<2x64xf32>
    %c0_43 = arith.constant 0 : index
    %c0_44 = arith.constant 0 : index
    %77 = vector.load %arg10[%c0_43, %c0_44] : memref<1x64xf32, #tpu.memory_space<vmem>>, vector<1x64xf32>
    %78 = vector.broadcast %77 : vector<1x64xf32> to vector<2x64xf32>
    %79 = arith.addf %76, %78 : vector<2x64xf32>
    %cst_45 = arith.constant dense<0xFF800000> : vector<2xf32>
    %80 = vector.multi_reduction <maximumf>, %79, %cst_45 [1] : vector<2x64xf32> to vector<2xf32>
    %81 = vector.shape_cast %80 : vector<2xf32> to vector<2x1xf32>
    %82 = vector.broadcast %81 : vector<2x1xf32> to vector<2x64xf32>
    %83 = arith.subf %79, %82 : vector<2x64xf32>
    %84 = math.exp %83 : vector<2x64xf32>
    %cst_46 = arith.constant dense<0.000000e+00> : vector<2xf32>
    %85 = vector.multi_reduction <add>, %84, %cst_46 [1] : vector<2x64xf32> to vector<2xf32>
    %86 = vector.shape_cast %85 : vector<2xf32> to vector<2x1xf32>
    %87 = tpu.reciprocal %86 {approx = true} : vector<2x1xf32> -> vector<2x1xf32>
    %88 = vector.broadcast %87 : vector<2x1xf32> to vector<2x64xf32>
    %89 = arith.mulf %84, %88 : vector<2x64xf32>
    %90 = arith.truncf %89 : vector<2x64xf32> to vector<2x64xbf16>
    %c0_47 = arith.constant 0 : index
    %c0_48 = arith.constant 0 : index
    %91 = vector.load %arg11[%c0_47, %c0_48] : memref<64x128xbf16, #tpu.memory_space<vmem>>, vector<64x128xbf16>
    %cst_49 = arith.constant dense<0.000000e+00> : vector<2x128xf32>
    %92 = tpu.matmul %90, %91, %cst_49 {dimension_numbers = #tpu.dot_dimension_numbers<[1], [0], [0], [1], [0, 0, 1, 1], [], []>} : vector<2x64xbf16>, vector<64x128xbf16>, vector<2x128xf32> -> vector<2x128xf32>
    %93 = arith.addf %92, %54 : vector<2x128xf32>
    %c0_50 = arith.constant 0 : index
    %c0_51 = arith.constant 0 : index
    %94 = vector.load %arg16[%c0_50, %c0_51] : memref<2x128xf32, #tpu.memory_space<vmem>>, vector<2x128xf32>
    tpu.vector_store %arg16[%c0_50, %c0_51], %93 {strides = array<i32>} : memref<2x128xf32, #tpu.memory_space<vmem>>, vector<2x128xf32>,
    return
  }
}

</mosaic_0001>

<bundles_post_ra>
// kernel: tpu_custom_call.1
= control target key start
LH: loop header
LB: loop body
LE: loop exit
PB: predicated region body
PF: predicated region fallthrough
CT: control target
= control target key end

     0   :  { %s1471_s0 = inlined_call_operand.vmem [shape: f32[16,1], index: 0, kind: input, shape index: {}]   ;;  %s1472_s1 = inlined_call_operand.vmem [shape: f32[2,1], index: 1, kind: input, shape index: {}]   ;;  %s1473_s2 = inlined_call_operand.vmem [shape: f32[16,128], index: 2, kind: input, shape index: {}]   ;;  %s1474_s3 = inlined_call_operand.vmem [shape: bf16[128,256], index: 3, kind: input, shape index: {}]   ;;  %s1475_s4 = inlined_call_operand.vmem [shape: bf16[128,16], index: 4, kind: input, shape index: {}]   ;;  %s1476_s5 = inlined_call_operand.vmem [shape: bf16[128,32], index: 5, kind: input, shape index: {}]   ;;  %s1477_s6 = inlined_call_operand.vmem [shape: f32[1,32], index: 6, kind: input, shape index: {}]   ;;  %s1478_s7 = inlined_call_operand.vmem [shape: bf16[32,32], index: 7, kind: input, shape index: {}]   ;;  %s1479_s8 = inlined_call_operand.vmem [shape: f32[1,32], index: 8, kind: input, shape index: {}]   ;;  %s1480_s9 = inlined_call_operand.hbm [shape: bf16[32,64], index: 9, kind: input, shape index: {}]   ;;  %s1481_s10 = inlined_call_operand.vmem [shape: f32[1,64], index: 10, kind: input, shape index: {}]   ;;  %s1482_s11 = inlined_call_operand.hbm [shape: bf16[64,128], index: 11, kind: input, shape index: {}]   ;;  %s1483_s12 = inlined_call_operand.hbm [shape: bf16[32,128], index: 12, kind: input, shape index: {}]   ;;  %s1484_s13 = inlined_call_operand.vmem [shape: f32[1,128], index: 13, kind: input, shape index: {}]   ;;  %s1485_s14 = inlined_call_operand.vmem [shape: f32[2,16], index: 14, kind: input, shape index: {}]   ;;  %s1486_s15 = inlined_call_operand.vmem [shape: f32[16,2], index: 15, kind: input, shape index: {}]   ;;  %s1487_s16 = inlined_call_operand.hbm [shape: f32[2,128], index: 16, kind: output, shape index: {}]  }
   0x1   :  { %1489 = sst [smem:[#allocation12_spill]] %s1471_s0 }
   0x2   :  { %21 = vsyncpa [#allocation3], 0 }
   0x3   :  { %22 = vsyncpa [#allocation6], 0 }
   0x4   :  { %23 = vsyncpa [#allocation4], 0  ;;  %s61_s23 = sshll.u32 %s1482_s11, 4  ;;  %s1161_s24 = smov [#allocation5]   ;;  %s62_s23 = int_to_ptr.hbm [resolvable:$true] %s61_s23 }
   0x5   :  { %s63_s25 = sshll.u32 %s1161_s24, 4  ;;  %s46_s28 = sshll.u32 %s1480_s9, 4  ;;  %s64_s25 = int_to_ptr.vmem [resolvable:$true] %s63_s25  ;;  %s47_s28 = int_to_ptr.hbm [resolvable:$true] %s46_s28 }
   0x6   :  { %s1162_s29 = smov 64   ;;  %s1163_s30 = smov 4  }
   0x7   :  { %69 = dma.hbm_to_vmem [thread:$0]  %s62_s23, 512, %s64_s25, [#allocation6], %s1162_s29, %s1162_s29, %s1163_s30  }
   0x8   :  { %s1164_s0 = smov [#allocation2]   ;;  %s74_s20 = sshll.u32 %s1483_s12, 4  ;;  %s75_s20 = int_to_ptr.hbm [resolvable:$true] %s74_s20 }
   0x9   :  { %s48_s17 = sshll.u32 %s1164_s0, 4  ;;  %s1165_s11 = smov [#allocation7]   ;;  %s49_s17 = int_to_ptr.vmem [resolvable:$true] %s48_s17 }
   0xa   :  { %54 = dma.hbm_to_vmem [thread:$0]  %s47_s28, 256, %s49_s17, [#allocation3], %s1162_s29, %s1162_s29, %s1163_s30  }
   0xb   :  { %s76_s21 = sshll.u32 %s1165_s11, 4  ;;  %s77_s21 = int_to_ptr.vmem [resolvable:$true] %s76_s21 }
   0xc   :  { %82 = dma.hbm_to_vmem [thread:$0]  %s75_s20, 256, %s77_s21, [#allocation6], %s1162_s29, %s1162_s29, %s1163_s30  }
   0xd   :  { %1155 = dma.done.wait [#allocation3], 256  }
   0xe   :  { %1156 = vsyncadd [#allocation3], 4294967040 }
   0xf   :  { %1157 = dma.done.wait [#allocation6], 768  }
  0x10   :  { %1158 = vsyncadd [#allocation6], 4294966528  ;;  %v868_v0 = vld [vmem:[%s1474_s3 + $0x70] sm:$0xf]  ;;  %v1005_v1 = vld [vmem:[%s1474_s3 + $0x74] sm:$0xf0] }
  0x11   :  { %v1004_v2 = vld [vmem:[%s1474_s3 + $0x74] sm:$0xf]  ;;  %v869_v3 = vor.u32 %v1005_v1, %v868_v0  ;;  %v870_v4 = vld [vmem:[%s1474_s3 + $0x78] sm:$0xf0]  ;;  %v860_v5 = vld [vmem:[%s1474_s3 + $0x60] sm:$0xf] }
  0x12   :  { %v1003_v6 = vld [vmem:[%s1474_s3 + $0x64] sm:$0xf0]  ;;  %v873_v7 = vor.u32 %v1004_v2, %v870_v4  ;;  %v1002_v8 = vld [vmem:[%s1474_s3 + $0x64] sm:$0xf]  ;;  %v862_v9 = vld [vmem:[%s1474_s3 + $0x68] sm:$0xf0] }
  0x13   :  { %207 = vmatpush.bf16.msra.mxu0 %v869_v3  ;;  %v861_v10 = vor.u32 %v1003_v6, %v860_v5  ;;  %v865_v11 = vor.u32 %v1002_v8, %v862_v9  ;;  %v852_v12 = vld [vmem:[%s1474_s3 + $0x50] sm:$0xf]  ;;  %v1001_v13 = vld [vmem:[%s1474_s3 + $0x54] sm:$0xf0]  ;;  %v1000_v14 = vld [vmem:[%s1474_s3 + $0x54] sm:$0xf] }
  0x14   :  { %221 = vmatpush.bf16.msra.mxu1 %v873_v7  ;;  %v854_v15 = vld [vmem:[%s1474_s3 + $0x58] sm:$0xf0]  ;;  %v853_v16 = vor.u32 %v1001_v13, %v852_v12  ;;  %v844_v18 = vld [vmem:[%s1474_s3 + $0x40] sm:$0xf]  ;;  %v999_v19 = vld [vmem:[%s1474_s3 + $0x44] sm:$0xf0] }
  0x15   :  { %v857_v17 = vor.u32 %v1000_v14, %v854_v15  ;;  %v998_v20 = vld [vmem:[%s1474_s3 + $0x44] sm:$0xf]  ;;  %v846_v21 = vld [vmem:[%s1474_s3 + $0x48] sm:$0xf0]  ;;  %v836_v22 = vld [vmem:[%s1474_s3 + $0x30] sm:$0xf]  ;;  %v845_v23 = vor.u32 %v999_v19, %v844_v18 }
  0x16   :  { %v997_v24 = vld [vmem:[%s1474_s3 + $0x34] sm:$0xf0]  ;;  %v996_v25 = vld [vmem:[%s1474_s3 + $0x34] sm:$0xf]  ;;  %v849_v27 = vor.u32 %v998_v20, %v846_v21  ;;  %v838_v28 = vld [vmem:[%s1474_s3 + $0x38] sm:$0xf0] }
  0x17   :  { %208 = vmatpush.bf16.msra.mxu0 %v861_v10  ;;  %v1013_v26 = vld [vmem:[%s1475_s4 + $0x38] sm:$0xff]  ;;  %v1012_v29 = vld [vmem:[%s1475_s4 + $0x30] sm:$0xff]  ;;  %v837_v30 = vor.u32 %v997_v24, %v836_v22  ;;  %v841_v31 = vor.u32 %v996_v25, %v838_v28  ;;  %v828_v32 = vld [vmem:[%s1474_s3 + $0x20] sm:$0xf]  ;;  %v1166_v63 = vmov 0   ;;  %s1490_s23 = sld [smem:[#allocation12_spill]] }
  0x18   :  { %222 = vmatpush.bf16.msra.mxu1 %v865_v11  ;;  %332 = vmatpush.bf16.msra.mxu2 %v1013_v26  ;;  %v995_v33 = vld [vmem:[%s1474_s3 + $0x24] sm:$0xf0]  ;;  %v994_v34 = vld [vmem:[%s1474_s3 + $0x24] sm:$0xf]  ;;  %v830_v35 = vld [vmem:[%s1474_s3 + $0x28] sm:$0xf0] }
  0x19   :  { %v1011_v36 = vld [vmem:[%s1475_s4 + $0x28] sm:$0xff]  ;;  %v829_v37 = vor.u32 %v995_v33, %v828_v32  ;;  %v833_v38 = vor.u32 %v994_v34, %v830_v35  ;;  %v820_v39 = vld [vmem:[%s1474_s3 + $0x10] sm:$0xf]  ;;  %v993_v40 = vld [vmem:[%s1474_s3 + $0x14] sm:$0xf0]  ;;  %1039 = vset.pattern.permute.xlu0 %v1166_v63  ;;  %1040 = vset.pattern.permute.xlu1 %v1166_v63  ;;  %vm362_vm4 = vcmask 130048  }
  0x1a   :  { %v992_v41 = vld [vmem:[%s1474_s3 + $0x14] sm:$0xf]  ;;  %v822_v42 = vld [vmem:[%s1474_s3 + $0x18] sm:$0xf0]  ;;  %v1010_v43 = vld [vmem:[%s1475_s4 + $0x20] sm:$0xff]  ;;  %v821_v44 = vor.u32 %v993_v40, %v820_v39  ;;  %vm651_vm5 = vcmask 261120  }
  0x1b   :  { %209 = vmatpush.bf16.msra.mxu0 %v853_v16  ;;  %v825_v45 = vor.u32 %v992_v41, %v822_v42  ;;  %v812_v46 = vld [vmem:[%s1474_s3] sm:$0xf]  ;;  %v991_v47 = vld [vmem:[%s1474_s3 + $0x4] sm:$0xf0]  ;;  %v990_v48 = vld [vmem:[%s1474_s3 + $0x4] sm:$0xf] }
  0x1c   :  { %223 = vmatpush.bf16.msra.mxu1 %v857_v17  ;;  %333 = vmatpush.bf16.msra.mxu2 %v1012_v29  ;;  %v814_v49 = vld [vmem:[%s1474_s3 + $0x8] sm:$0xf0]  ;;  %v813_v50 = vor.u32 %v991_v47, %v812_v46  ;;  %v108_v51 = vld [vmem:[%s1473_s2] sm:$0xff]  ;;  %v1009_v55 = vld [vmem:[%s1475_s4 + $0x18] sm:$0xff]  ;;  %vm399_vm6 = vcmask 1041408   ;;  %vm392_vm7 = vcmask 15360  }
  0x1d   :  { %v109_v52 = vld [vmem:[%s1473_s2 + $0x8] sm:$0xff]  ;;  %v817_v53 = vor.u32 %v990_v48, %v814_v49  ;;  %v1008_v56 = vld [vmem:[%s1475_s4 + $0x10] sm:$0xff]  ;;  %v1023_v57 = vld [vmem:[%s1476_s5 + $0x38] sm:$0xff]  ;;  %vm729_vm10 = vcmask 517120   ;;  %vm774_vm11 = vcmask 523264   ;;  %s1167_s24 = smov [#allocation8]  }
  0x1e   :  { %v110_v54 = vpack.c.bf16 %v109_v52, %v108_v51  ;;  %v1007_v58 = vld [vmem:[%s1475_s4 + $0x8] sm:$0xff]  ;;  %v1022_v59 = vld [vmem:[%s1476_s5 + $0x30] sm:$0xff]  ;;  %v1006_v60 = vld [vmem:[%s1475_s4] sm:$0xff]  ;;  %s797_s12 = sshll.u32 %s1167_s24, 4  ;;  %s799_s26 = sshll.u32 %s1487_s16, 4  ;;  %s798_s12 = int_to_ptr.vmem [resolvable:$true] %s797_s12  ;;  %s800_s26 = int_to_ptr.hbm [resolvable:$true] %s799_s26 }
  0x1f   :  { %210 = vmatpush.bf16.msra.mxu0 %v845_v23  ;;  %v1021_v61 = vld [vmem:[%s1476_s5 + $0x28] sm:$0xff]  ;;  %v1020_v62 = vld [vmem:[%s1476_s5 + $0x20] sm:$0xff]  ;;  %v1019_v1 = vld [vmem:[%s1476_s5 + $0x18] sm:$0xff] }
  0x20   :  { %224 = vmatpush.bf16.msra.mxu1 %v849_v27  ;;  %334 = vmatpush.bf16.msra.mxu2 %v1011_v36  ;;  %v103_v0 = vld [vmem:[%s1490_s23 + $0x8] sm:$0xff]  ;;  %v1018_v2 = vld [vmem:[%s1476_s5 + $0x10] sm:$0xff]  ;;  %v1016_v5 = vld [vmem:[%s1476_s5] sm:$0xff] }
  0x21   :  { %357 = vperm.xlu0 %1039, %v103_v0   ;;  %v1017_v3 = vld [vmem:[%s1476_s5 + $0x8] sm:$0xff]  ;;  %v102_v11 = vld [vmem:[%s1490_s23] sm:$0xff] }
  0x22   :  { %v1025_v40 = vld [vmem:[%s1478_s7 + $0x8] sm:$0xff]  ;;  %v1024_v41 = vld [vmem:[%s1478_s7] sm:$0xff] }
  0x23   :  { %211 = vmatpush.bf16.msra.mxu0 %v837_v30 }
  0x24   :  { %225 = vmatpush.bf16.msra.mxu1 %v841_v31  ;;  %335 = vmatpush.bf16.msra.mxu2 %v1010_v43  ;;  %v104_v43 = vld [vmem:[%s1472_s1] sm:$0x3] }
  0x25   :  { %388 = vperm.xlu1 %1040, %v104_v43  }
  0x27   :  { %212 = vmatpush.bf16.msra.mxu0 %v829_v37 }
  0x28   :  { %226 = vmatpush.bf16.msra.mxu1 %v833_v38  ;;  %336 = vmatpush.bf16.msra.mxu2 %v1009_v55 }
  0x29   :  { %352 = vperm.xlu0 %1039, %v102_v11  }
  0x2b   :  { %213 = vmatpush.bf16.msra.mxu0 %v821_v44 }
  0x2c   :  { %227 = vmatpush.bf16.msra.mxu1 %v825_v45  ;;  %337 = vmatpush.bf16.msra.mxu2 %v1008_v56 }
  0x2f   :  { %214 = vmatpush.bf16.msra.mxu0 %v813_v50 }
  0x30   :  { %228 = vmatpush.bf16.msra.mxu1 %v817_v53  ;;  %338 = vmatpush.bf16.msra.mxu2 %v1007_v58 }
  0x32   :  { %215 = vmatmul.bf16.vlgmr.msra.gmra.mxu0 %v110_v54 }
  0x33   :  { %229 = vmatmul.bf16.vlgmr.msra.gmra.mxu1 %v110_v54  ;;  %v1041_v54 = vld [vmem:[%s1477_s6] ss:$0 sm:$0xff] }
  0x34   :  { %614 = vmatpush.bf16.msrb.mxu1 %v1023_v57  ;;  %339 = vmatpush.bf16.msra.mxu2 %v1006_v60  ;;  %v1433_v57 = vld [vmem:[%s1485_s14] sm:$0x3] }
  0x38   :  { %615 = vmatpush.bf16.msrb.mxu1 %v1022_v59  ;;  %661 = vmatpush.bf16.msrb.mxu2 %v1025_v40 }
  0x3c   :  { %616 = vmatpush.bf16.msrb.mxu1 %v1021_v61  ;;  %662 = vmatpush.bf16.msrb.mxu2 %v1024_v41 }
  0x40   :  { %617 = vmatpush.bf16.msrb.mxu1 %v1020_v62 }
  0x44   :  { %618 = vmatpush.bf16.msrb.mxu1 %v1019_v1 }
  0x48   :  { %619 = vmatpush.bf16.msrb.mxu1 %v1018_v2 }
  0x4c   :  { %620 = vmatpush.bf16.msrb.mxu1 %v1017_v3  ;;  %v106_v3 = vld [vmem:[%s1486_s15] sm:$0xff] }
  0x50   :  { %621 = vmatpush.bf16.msrb.mxu1 %v1016_v5 }
  0x93   :  { %v358_v46 = vpop.permute.xlu0 %357 }
  0x97   :  { %v1438_v0 = vpop.permute.xlu1 %388 }
  0x9b   :  { %v353_v53 = vpop.permute.xlu0 %352 }
  0xaf   :  { %v216_v4 = vpop.f32.mrf.mxu0 }
  0xb0   :  { %v235_v6 = vmul.f32 %v216_v4, %v216_v4  ;;  %v230_v7 = vpop.f32.mrf.mxu1  ;;  %v107_v4 = vld [vmem:[%s1486_s15 + $0x8] sm:$0xff] }
  0xb1   :  { %v237_v8 = vmul.f32 %v230_v7, %v230_v7 }
  0xb3   :  { %v239_v9 = vadd.f32 %v237_v8, %v235_v6 }
  0xb5   :  { %v241_v10 = vadd.f32 1e-06, %v239_v9 }
  0xb7   :  { %1045 = vrsqrt.f32 %v241_v10  ;;  %v218_v12 = vpop.f32.mrf.mxu0  ;;  %vm250_vm0 = vcmp.eq.f32.partialorder %v241_v10, inf  ;;  %v253_v34 = vand.u32 2147483648, %v241_v10  ;;  %vm252_vm2 = vcmp.eq.f32.partialorder %v241_v10, 0.0 }
  0xb8   :  { %v236_v13 = vmul.f32 %v218_v12, %v218_v12  ;;  %v232_v14 = vpop.f32.mrf.mxu1 }
  0xb9   :  { %v238_v15 = vmul.f32 %v232_v14, %v232_v14  ;;  %v1015_v14 = vld [vmem:[#allocation7 + $0x8] sm:$0xff] }
  0xbb   :  { %v240_v16 = vadd.f32 %v238_v15, %v236_v13  ;;  %v1042_v15 = vld [vmem:[%s1479_s8] ss:$0 sm:$0xff] }
  0xbd   :  { %v1046_v17 = vpop.eup %1045  ;;  %v242_v18 = vadd.f32 1e-06, %v240_v16  ;;  %v267_v19 = vpack.c.bf16 %v240_v16, %v239_v9 }
  0xbe   :  { %v244_v20 = vmul.f32 %v1046_v17, %v241_v10 }
  0xbf   :  { %1047 = vrsqrt.f32 %v242_v18  ;;  %340 = vmatmul.bf16.vlgmr.msra.gmra.mxu2 %v267_v19  ;;  %vm262_vm1 = vcmp.eq.f32.partialorder %v242_v18, inf  ;;  %v265_v35 = vand.u32 2147483648, %v242_v18  ;;  %vm264_vm3 = vcmp.eq.f32.partialorder %v242_v18, 0.0 }
  0xc0   :  { %v245_v21 = vmul.f32 %v1046_v17, %v244_v20 }
  0xc2   :  { %v246_v22 = vmul.f32 0.5, %v245_v21  ;;  %v1014_v21 = vld [vmem:[#allocation7] sm:$0xff] }
  0xc3   :  { %534 = vmatpush.bf16.msrb.mxu0 %v1014_v21 }
  0xc4   :  { %v247_v23 = vsub.f32 1.5, %v246_v22 }
  0xc5   :  { %v1048_v24 = vpop.eup %1047 }
  0xc6   :  { %v256_v25 = vmul.f32 %v1048_v24, %v242_v18  ;;  %v248_v26 = vmul.f32 %v1046_v17, %v247_v23 }
  0xc8   :  { %v257_v27 = vmul.f32 %v1048_v24, %v256_v25  ;;  %v249_v29 = vmul.f32 %v248_v26, %v241_v10 }
  0xca   :  { %v258_v28 = vmul.f32 0.5, %v257_v27  ;;  %v251_v32 = vsel %vm250_vm0, %v241_v10, %v249_v29 }
  0xcb   :  { %v254_v37 = vsel %vm252_vm2, %v253_v34, %v251_v32 }
  0xcc   :  { %v259_v30 = vsub.f32 1.5, %v258_v28 }
  0xce   :  { %v260_v31 = vmul.f32 %v1048_v24, %v259_v30 }
  0xd0   :  { %v261_v33 = vmul.f32 %v260_v31, %v242_v18 }
  0xd2   :  { %v263_v36 = vsel %vm262_vm1, %v242_v18, %v261_v33 }
  0xd3   :  { %v266_v38 = vsel %vm264_vm3, %v265_v35, %v263_v36 }
  0xd4   :  { %v545_v39 = vpack.c.bf16 %v266_v38, %v254_v37 }
  0xd6   :  { %622 = vmatmul.bf16.vlgmr.msrb.gmra.mxu1 %v545_v39 }
 0x142   :  { %v341_v42 = vpop.f32.mrf.mxu2 }
 0x143   :  { %v342_v44 = vadd.f32 1e-06, %v341_v42 }
 0x145   :  { %1049 = vlog2.f32 %v342_v44  ;;  %v1027_v44 = vld [vmem:[#allocation2 + $0x8] sm:$0xff] }
 0x146   :  { %722 = vmatpush.bf16.msra.mxu0 %v1027_v44 }
 0x14a   :  { %v343_v45 = vpop.f32.mrf.mxu2 }
 0x14b   :  { %v344_v47 = vadd.f32 1e-06, %v343_v45  ;;  %v1050_v48 = vpop.eup %1049  ;;  %v1026_v45 = vld [vmem:[#allocation2] sm:$0xff] }
 0x14c   :  { %v347_v51 = vmul.f32 0.6931472, %v1050_v48  ;;  %723 = vmatpush.bf16.msra.mxu0 %v1026_v45 }
 0x14d   :  { %1051 = vlog2.f32 %v344_v47 }
 0x14e   :  { %v360_v56 = vmul.f32 %v353_v53, %v347_v51 }
 0x153   :  { %v1052_v49 = vpop.eup %1051  ;;  %v623_v50 = vpop.f32.mrf.mxu1 }
 0x154   :  { %v349_v52 = vmul.f32 0.6931472, %v1052_v49  ;;  %v624_v58 = vadd.f32 %v1041_v54, %v623_v50 }
 0x156   :  { %v361_v55 = vmul.f32 %v358_v46, %v349_v52  ;;  %v628_v61 = vmul.f32 %v624_v58, %v353_v53 }
 0x158   :  { %380 = vmatpush.msra.mxu3 %v361_v55 }
 0x15a   :  { %381 = vmatpush.msra.mxu3 %v360_v56 }
 0x15b   :  { %906 = vmatmul.msk.f32.vlgmr.msra.gmra.mxu3 %vm362_vm4, %v1433_v57  ;;  %v625_v59 = vpop.f32.mrf.mxu1 }
 0x15c   :  { %v626_v60 = vadd.f32 %v1041_v54, %v625_v59 }
 0x15e   :  { %v629_v62 = vmul.f32 %v626_v60, %v358_v46 }
 0x160   :  { %v630_v63 = vpack.c.bf16 %v629_v62, %v628_v61 }
 0x162   :  { %962 = vmatmul.msk.bf16.vlgmr.msrb.gmra.mxu2 %vm651_vm5, %v630_v63  ;;  %v1030_v63 = vld [vmem:[#allocation5 + $0x10] sm:$0xff] }
 0x1de   :  { %v383_v1 = vpop.f32.mrf.mxu3 }
 0x1df   :  { %v391_v2 = vmul.f32 %v1438_v0, %v383_v1  ;;  %v1028_v1 = vld [vmem:[#allocation5] sm:$0xff] }
 0x1e1   :  { %907 = vmatpush.msk.msrb.mxu3 %vm399_vm6, %v391_v2 }
 0x1e2   :  { %908 = vmatmul.msk.f32.vlgmr.msrb.gmra.mxu3 %vm392_vm7, %v106_v3 }
 0x1e5   :  { %v664_v6 = vpop.f32.mrf.mxu2 }
 0x1e6   :  { %v665_v18 = vadd.f32 %v1042_v15, %v664_v6  ;;  %v1044_v6 = vld [vmem:[%s1484_s13] ss:$0 sm:$0xff] }
 0x1e8   :  { %v669_v20 = vmul.f32 %v665_v18, %v353_v53 }
 0x1ea   :  { %909 = vmatmul.msk.f32.gmra.mxu3 %vm392_vm7, %v107_v4 }
 0x1ed   :  { %v666_v13 = vpop.f32.mrf.mxu2 }
 0x1ee   :  { %v667_v17 = vadd.f32 %v1042_v15, %v666_v13 }
 0x1f0   :  { %v670_v19 = vmul.f32 %v667_v17, %v358_v46 }
 0x265   :  { %v420_v5 = vpop.f32.mrf.mxu3 }
 0x266   :  { %v426_v8 = vsub.f32 %v347_v51, %v420_v5 }
 0x268   :  { %v428_v11 = vmul.f32 %v426_v8, %v353_v53 }
 0x26a   :  { %v451_v16 = vmul.f32 %v428_v11, %v428_v11 }
 0x26d   :  { %v423_v7 = vpop.f32.mrf.mxu3 }
 0x26e   :  { %v427_v9 = vsub.f32 %v349_v52, %v423_v7  ;;  %v1043_v52 = vld [vmem:[%s1481_s10] ss:$0 sm:$0xff] }
 0x270   :  { %v429_v10 = vmul.f32 %v427_v9, %v358_v46 }
 0x272   :  { %v452_v12 = vmul.f32 %v429_v10, %v429_v10  ;;  %444 = vmatpush.msra.mxu3 %v429_v10 }
 0x274   :  { %445 = vmatpush.msra.mxu3 %v428_v11 }
 0x275   :  { %910 = vmatmul.msk.f32.vlgmr.msra.gmra.mxu3 %vm362_vm4, %v1433_v57 }
 0x276   :  { %467 = vmatpush.msrb.mxu3 %v452_v12 }
 0x278   :  { %468 = vmatpush.msrb.mxu3 %v451_v16 }
 0x27a   :  { %512 = vmatpush.bf16.msra.mxu3 %v1015_v14 }
 0x27d   :  { %911 = vmatmul.msk.f32.vlgmr.msrb.gmra.mxu3 %vm362_vm4, %v1433_v57 }
 0x27e   :  { %685 = vmatpush.msrb.mxu3 %v670_v19 }
 0x280   :  { %686 = vmatpush.msrb.mxu3 %v669_v20 }
 0x2f8   :  { %v447_v22 = vpop.f32.mrf.mxu3 }
 0x2f9   :  { %v450_v23 = vmul.f32 %v447_v22, %v1438_v0 }
 0x2fb   :  { %v490_v24 = vpack.c.bf16 %v450_v23, %v450_v23  ;;  %v474_v26 = vmul.f32 %v450_v23, %v450_v23 }
 0x2fd   :  { %921 = vmatmul.msk.bf16.vlgmr.msrb.gmra.mxu0 %vm362_vm4, %v490_v24 }
 0x300   :  { %v470_v25 = vpop.f32.mrf.mxu3 }
 0x301   :  { %v473_v27 = vmul.f32 %v470_v25, %v1438_v0 }
 0x303   :  { %v475_v28 = vsub.f32 %v473_v27, %v474_v26 }
 0x305   :  { %v476_v29 = vmax.f32 %v475_v28, 0.0 }
 0x307   :  { %v477_v30 = vadd.f32 1e-06, %v476_v29 }
 0x309   :  { %1053 = vrsqrt.f32 %v477_v30  ;;  %vm485_vm8 = vcmp.eq.f32.partialorder %v477_v30, inf  ;;  %v488_v38 = vand.u32 2147483648, %v477_v30  ;;  %vm487_vm9 = vcmp.eq.f32.partialorder %v477_v30, 0.0 }
 0x30f   :  { %v1054_v31 = vpop.eup %1053 }
 0x310   :  { %v479_v32 = vmul.f32 %v1054_v31, %v477_v30 }
 0x312   :  { %v480_v33 = vmul.f32 %v1054_v31, %v479_v32 }
 0x314   :  { %v481_v34 = vmul.f32 0.5, %v480_v33 }
 0x316   :  { %v482_v35 = vsub.f32 1.5, %v481_v34 }
 0x318   :  { %v483_v36 = vmul.f32 %v1054_v31, %v482_v35 }
 0x31a   :  { %v484_v37 = vmul.f32 %v483_v36, %v477_v30 }
 0x31c   :  { %v486_v39 = vsel %vm485_vm8, %v477_v30, %v484_v37 }
 0x31d   :  { %v489_v40 = vsel %vm487_vm9, %v488_v38, %v486_v39 }
 0x31e   :  { %v493_v41 = vpack.c.bf16 %v489_v40, %v489_v40 }
 0x320   :  { %916 = vmatmul.msk.bf16.vlgmr.msra.gmra.mxu3 %vm362_vm4, %v493_v41 }
 0x330   :  { %963 = vmatmul.msk.f32.vlgmr.msrb.gmra.mxu3 %vm362_vm4, %v1433_v57  ;;  %v1031_v57 = vld [vmem:[#allocation5 + $0x18] sm:$0xff] }
 0x331   :  { %782 = vmatpush.bf16.msra.mxu2 %v1031_v57 }
 0x335   :  { %783 = vmatpush.bf16.msra.mxu2 %v1030_v63 }
 0x37a   :  { %v536_v42 = vpop.f32.mrf.mxu0 }
 0x382   :  { %v538_v43 = vpop.f32.mrf.mxu0 }
 0x3a3   :  { %v514_v46 = vpop.f32.mrf.mxu3 }
 0x3a4   :  { %v537_v47 = vadd.f32 %v536_v42, %v514_v46 }
 0x3a6   :  { %v544_v7 = vadd.f32 %v1044_v6, %v537_v47 }
 0x3ab   :  { %v516_v48 = vpop.f32.mrf.mxu3 }
 0x3b3   :  { %v688_v49 = vpop.f32.mrf.mxu3 }
 0x3b4   :  { %v691_v50 = vmul.f32 %v688_v49, %v1438_v0  ;;  %v1029_v0 = vld [vmem:[#allocation5 + $0x8] sm:$0xff] }
 0x3b5   :  { %784 = vmatpush.bf16.msra.mxu2 %v1029_v0 }
 0x3b6   :  { %v692_v51 = vpack.c.bf16 %v691_v50, %v691_v50 }
 0x3b8   :  { %972 = vmatmul.msk.bf16.vlgmr.msra.gmra.mxu0 %vm651_vm5, %v692_v51 }
 0x3b9   :  { %785 = vmatpush.bf16.msra.mxu2 %v1028_v1 }
 0x435   :  { %v725_v53 = vpop.f32.mrf.mxu0 }
 0x436   :  { %v726_v54 = vadd.f32 %v1043_v52, %v725_v53 }
 0x438   :  { %v730_v55 = vsel %vm729_vm10, %v726_v54, -inf }
 0x439   :  { %731 = vmax.xlane.f32.xlu1 %v730_v55 }
 0x43d   :  { %v727_v56 = vpop.f32.mrf.mxu0 }
 0x4ac   :  { %v732_v58 = vpop.xlane.xlu1 %731 }
 0x4ad   :  { %v733_v59 = vsub.f32 %v726_v54, %v732_v58 }
 0x4af   :  { %v734_v60 = vmul.f32 1.442695, %v733_v59 }
 0x4b1   :  { %1055 = vpow2.f32 %v734_v60 }
 0x4b7   :  { %v1056_v61 = vpop.eup %1055 }
 0x4b8   :  { %v736_v62 = vsel %vm729_vm10, %v1056_v61, 0.0 }
 0x4b9   :  { %737 = vadd.xlane.f32.xlu2 %v736_v62 }
 0x52c   :  { %v738_v2 = vpop.xlane.xlu2 %737 }
 0x52d   :  { %1057 = vrcp.f32 %v738_v2 }
 0x533   :  { %v1058_v3 = vpop.eup %1057 }
 0x534   :  { %v740_v4 = vmul.f32 %v1058_v3, %v1056_v61 }
 0x536   :  { %v741_v5 = vpack.c.bf16 %v740_v4, %v740_v4 }
 0x538   :  { %989 = vmatmul.msk.bf16.vlgmr.msra.gmra.mxu2 %vm774_vm11, %v741_v5 }
 0x5bb   :  { %v787_v8 = vpop.f32.mrf.mxu2 }
 0x5bc   :  { %v788_v9 = vadd.f32 %v787_v8, %v544_v7 }
 0x5be   :  { %791 = vst [vmem:[#allocation8] sm:$0x3] %v788_v9 }
 0x5bf   :  { %802 = dma.vmem_to_hbm [thread:$0]  %s798_s12, 32, %s800_s26, [#allocation4]  }
 0x5c3   :  { %v789_v10 = vpop.f32.mrf.mxu2 }
 0x5c4   :  { %1159 = dma.done.wait [#allocation4], 32  }
 0x5c5   :  { %1160 = vsyncadd [#allocation4], 4294967264 }
 0x5c6   :  { %807 = vsyncpa [#allocation3], 1 }
 0x5c7   :  { %808 = vsyncpa [#allocation6], 1 }
 0x5c8   :  { %809 = vsyncpa [#allocation4], 1 }

</bundles_post_ra>
